<compile_context>
chip_gen: v7x
topology: tpu7x:2x2x1
jax: 0.10.0
libtpu: 0.0.40
codegen_flags: <defaults>
</compile_context>

<pallas_src>
import jax
import jax.numpy as jnp
from jax import lax
from jax.experimental import pallas as pl
from jax.experimental.pallas import tpu as pltpu


def rnn_fc_kernel(x_ref, wih_ref, whh_ref, b_ref, wfc_ref, bfc_ref,
                  y_ref, xw_ref):
    # Static shapes:
    #   x_ref   : (T*B, I)   time-major, flattened over (t, b)
    #   wih_ref : (I, H)     whh_ref : (H, H)     b_ref  : (1, H)
    #   wfc_ref : (H, O)     bfc_ref : (1, O)     y_ref  : (B, O)
    #   xw_ref  : (T*B, H)   VMEM scratch holding the hoisted projection
    B = y_ref.shape[0]
    TB = x_ref.shape[0]
    T = TB // B
    H = whh_ref.shape[0]

    # Hoisted input projection + bias: one MXU pass for all timesteps.
    # Removes W_ih traffic and the bias broadcast from the recurrent path.
    xw_ref[...] = (jnp.dot(x_ref[...], wih_ref[...],
                           preferred_element_type=jnp.float32)
                   + b_ref[...])

    w_hh = whh_ref[...]                       # loaded once, resident in vregs

    def step(t, h):
        row = pl.multiple_of(t * B, B)        # sublane-aligned chunk start
        pre = xw_ref[pl.ds(row, B), :] + jnp.dot(
            h, w_hh, preferred_element_type=jnp.float32)
        return jnp.tanh(pre)

    # h_0 = None -> zeros; recurrence is inherently sequential, unrolled so the
    # LLO scheduler can overlap MXU push/pop of step t with tanh of step t-1.
    h_last = lax.fori_loop(0, T, step, jnp.zeros((B, H), jnp.float32),
                           unroll=True)

    # y = h_T @ W_fc + b_fc  (only the last timestep feeds the Linear)
    y = (jnp.dot(h_last, wfc_ref[...], preferred_element_type=jnp.float32)
         + bfc_ref[...])
    y_ref[...] = y.astype(y_ref.dtype)


def my_rnn_net_forward(x, w_ih, w_hh, b_rnn, w_fc, b_fc):
    """x: (B, T, I) batch_first, like the PyTorch module."""
    B, T, I = x.shape
    H = w_ih.shape[1]
    O = w_fc.shape[1]

    # Time-major then flatten (t, b) -> rows, so the hoisted projection is a
    # single (T*B, I) @ (I, H) matmul and each timestep is B contiguous rows.
    x_tm = jnp.transpose(x, (1, 0, 2)).reshape(T * B, I)
    b_rnn2 = b_rnn.reshape(1, H).astype(jnp.float32)
    b_fc2 = b_fc.reshape(1, O).astype(jnp.float32)

    full = lambda i: (0, 0)
    return pl.pallas_call(
        rnn_fc_kernel,
        out_shape=jax.ShapeDtypeStruct((B, O), x.dtype),
        grid_spec=pltpu.PrefetchScalarGridSpec(
            num_scalar_prefetch=0,
            grid=(1,),                                   # whole net in one invocation
            in_specs=[
                pl.BlockSpec((T * B, I), full),          # x (time-major, flat)
                pl.BlockSpec((I, H), full),              # W_ih
                pl.BlockSpec((H, H), full),              # W_hh
                pl.BlockSpec((1, H), full),              # b_ih + b_hh
                pl.BlockSpec((H, O), full),              # W_fc
                pl.BlockSpec((1, O), full),              # b_fc
            ],
            out_specs=pl.BlockSpec((B, O), full),
            scratch_shapes=[pltpu.VMEM((T * B, H), jnp.float32)],  # hoisted x@W_ih
        ),
        compiler_params=pltpu.CompilerParams(
            dimension_semantics=("arbitrary",)),
    )(x_tm, w_ih, w_hh, b_rnn2, w_fc, b_fc2)


def reference_forward(x, w_ih, w_hh, b_rnn, w_fc, b_fc):
    B, T, I = x.shape
    H = w_ih.shape[1]
    h = jnp.zeros((B, H), jnp.float32)
    for t in range(T):
        h = jnp.tanh(x[:, t, :] @ w_ih + h @ w_hh + b_rnn)
    return h @ w_fc + b_fc


if __name__ == "__main__":
    # Small shapes consistent with the module's forward.
    B, T, I, H, O = 8, 8, 16, 32, 8

    key = jax.random.PRNGKey(0)
    kx, k1, k2, k3, k4, k5, k6 = jax.random.split(key, 7)
    scale = 1.0 / jnp.sqrt(H)

    x = jax.random.normal(kx, (B, T, I), jnp.float32)
    # Deterministic parameter init (PyTorch stores (H,I)/(H,H)/(O,H); we keep
    # the transposed, matmul-friendly layout directly).
    w_ih = jax.random.uniform(k1, (I, H), jnp.float32, -scale, scale)
    w_hh = jax.random.uniform(k2, (H, H), jnp.float32, -scale, scale)
    b_ih = jax.random.uniform(k3, (H,), jnp.float32, -scale, scale)
    b_hh = jax.random.uniform(k4, (H,), jnp.float32, -scale, scale)
    b_rnn = b_ih + b_hh
    w_fc = jax.random.uniform(k5, (H, O), jnp.float32, -scale, scale)
    b_fc = jax.random.uniform(k6, (O,), jnp.float32, -scale, scale)

    y = my_rnn_net_forward(x, w_ih, w_hh, b_rnn, w_fc, b_fc)
    y = jax.block_until_ready(y)

    y_ref = reference_forward(x, w_ih, w_hh, b_rnn, w_fc, b_fc)
    assert y.shape == (B, O)
    assert jnp.allclose(y, y_ref, atol=1e-5, rtol=1e-5), "mismatch vs pure-JAX reference"

    print("KERNEL_OK")
</pallas_src>

<mosaic_0001>
module attributes {stable_mosaic.version = 11 : i64} {
  func.func @rnn_fc_kernel(%arg0: i32, %arg1: memref<64x16xf32, #tpu.memory_space<vmem>>, %arg2: memref<16x32xf32, #tpu.memory_space<vmem>>, %arg3: memref<32x32xf32, #tpu.memory_space<vmem>>, %arg4: memref<1x32xf32, #tpu.memory_space<vmem>>, %arg5: memref<32x8xf32, #tpu.memory_space<vmem>>, %arg6: memref<1x8xf32, #tpu.memory_space<vmem>>, %arg7: memref<8x8xf32, #tpu.memory_space<vmem>>, %arg8: memref<64x32xf32, #tpu.memory_space<vmem>>) attributes {dimension_semantics = [#tpu.dimension_semantics<arbitrary>], iteration_bounds = array<i64: 1>, scalar_prefetch = 0 : i64, scratch_operands = 1 : i64, tpu.core_type = #tpu.core_type<tc>, window_params = [{pipeline_mode = #tpu.pipeline_mode<synchronous>, transform_indices = @transform_0, window_bounds = array<i64: 64, 16>}, {pipeline_mode = #tpu.pipeline_mode<synchronous>, transform_indices = @transform_1, window_bounds = array<i64: 16, 32>}, {pipeline_mode = #tpu.pipeline_mode<synchronous>, transform_indices = @transform_2, window_bounds = array<i64: 32, 32>}, {pipeline_mode = #tpu.pipeline_mode<synchronous>, transform_indices = @transform_3, window_bounds = array<i64: 1, 32>}, {pipeline_mode = #tpu.pipeline_mode<synchronous>, transform_indices = @transform_4, window_bounds = array<i64: 32, 8>}, {pipeline_mode = #tpu.pipeline_mode<synchronous>, transform_indices = @transform_5, window_bounds = array<i64: 1, 8>}, {pipeline_mode = #tpu.pipeline_mode<synchronous>, transform_indices = @transform_6, window_bounds = array<i64: 8, 8>}]} {
    %c0 = arith.constant 0 : index
    %c0_0 = arith.constant 0 : index
    %0 = vector.load %arg1[%c0, %c0_0] : memref<64x16xf32, #tpu.memory_space<vmem>>, vector<64x16xf32>
    %c0_1 = arith.constant 0 : index
    %c0_2 = arith.constant 0 : index
    %1 = vector.load %arg2[%c0_1, %c0_2] : memref<16x32xf32, #tpu.memory_space<vmem>>, vector<16x32xf32>
    %cst = arith.constant dense<0.000000e+00> : vector<64x32xf32>
    %2 = tpu.matmul %0, %1, %cst {dimension_numbers = #tpu.dot_dimension_numbers<[1], [0], [0], [1], [0, 0, 1, 1], [], []>} : vector<64x16xf32>, vector<16x32xf32>, vector<64x32xf32> -> vector<64x32xf32>
    %c0_3 = arith.constant 0 : index
    %c0_4 = arith.constant 0 : index
    %3 = vector.load %arg4[%c0_3, %c0_4] : memref<1x32xf32, #tpu.memory_space<vmem>>, vector<1x32xf32>
    %4 = vector.broadcast %3 : vector<1x32xf32> to vector<64x32xf32>
    %5 = arith.addf %2, %4 : vector<64x32xf32>
    %c0_5 = arith.constant 0 : index
    %c0_6 = arith.constant 0 : index
    %6 = vector.load %arg8[%c0_5, %c0_6] : memref<64x32xf32, #tpu.memory_space<vmem>>, vector<64x32xf32>
    tpu.vector_store %arg8[%c0_5, %c0_6], %5 {strides = array<i32>} : memref<64x32xf32, #tpu.memory_space<vmem>>, vector<64x32xf32>,
    %c0_7 = arith.constant 0 : index
    %c0_8 = arith.constant 0 : index
    %7 = vector.load %arg3[%c0_7, %c0_8] : memref<32x32xf32, #tpu.memory_space<vmem>>, vector<32x32xf32>
    %cst_9 = arith.constant 0.000000e+00 : f32
    %8 = vector.broadcast %cst_9 : f32 to vector<8x32xf32>
    %c0_i32 = arith.constant 0 : i32
    %c8_i32 = arith.constant 8 : i32
    %9 = arith.muli %c0_i32, %c8_i32 : i32
    %10 = tpu.assume_multiple %9, 8 : i32
    %11 = arith.index_cast %10 : i32 to index
    %c0_10 = arith.constant 0 : index
    %12 = vector.load %arg8[%11, %c0_10] : memref<64x32xf32, #tpu.memory_space<vmem>>, vector<8x32xf32>
    %cst_11 = arith.constant dense<0.000000e+00> : vector<8x32xf32>
    %13 = tpu.matmul %8, %7, %cst_11 {dimension_numbers = #tpu.dot_dimension_numbers<[1], [0], [0], [1], [0, 0, 1, 1], [], []>} : vector<8x32xf32>, vector<32x32xf32>, vector<8x32xf32> -> vector<8x32xf32>
    %14 = arith.addf %12, %13 : vector<8x32xf32>
    %15 = math.tanh %14 : vector<8x32xf32>
    %c1_i32 = arith.constant 1 : i32
    %c8_i32_12 = arith.constant 8 : i32
    %16 = arith.muli %c1_i32, %c8_i32_12 : i32
    %17 = tpu.assume_multiple %16, 8 : i32
    %18 = arith.index_cast %17 : i32 to index
    %c0_13 = arith.constant 0 : index
    %19 = vector.load %arg8[%18, %c0_13] : memref<64x32xf32, #tpu.memory_space<vmem>>, vector<8x32xf32>
    %cst_14 = arith.constant dense<0.000000e+00> : vector<8x32xf32>
    %20 = tpu.matmul %15, %7, %cst_14 {dimension_numbers = #tpu.dot_dimension_numbers<[1], [0], [0], [1], [0, 0, 1, 1], [], []>} : vector<8x32xf32>, vector<32x32xf32>, vector<8x32xf32> -> vector<8x32xf32>
    %21 = arith.addf %19, %20 : vector<8x32xf32>
    %22 = math.tanh %21 : vector<8x32xf32>
    %c2_i32 = arith.constant 2 : i32
    %c8_i32_15 = arith.constant 8 : i32
    %23 = arith.muli %c2_i32, %c8_i32_15 : i32
    %24 = tpu.assume_multiple %23, 8 : i32
    %25 = arith.index_cast %24 : i32 to index
    %c0_16 = arith.constant 0 : index
    %26 = vector.load %arg8[%25, %c0_16] : memref<64x32xf32, #tpu.memory_space<vmem>>, vector<8x32xf32>
    %cst_17 = arith.constant dense<0.000000e+00> : vector<8x32xf32>
    %27 = tpu.matmul %22, %7, %cst_17 {dimension_numbers = #tpu.dot_dimension_numbers<[1], [0], [0], [1], [0, 0, 1, 1], [], []>} : vector<8x32xf32>, vector<32x32xf32>, vector<8x32xf32> -> vector<8x32xf32>
    %28 = arith.addf %26, %27 : vector<8x32xf32>
    %29 = math.tanh %28 : vector<8x32xf32>
    %c3_i32 = arith.constant 3 : i32
    %c8_i32_18 = arith.constant 8 : i32
    %30 = arith.muli %c3_i32, %c8_i32_18 : i32
    %31 = tpu.assume_multiple %30, 8 : i32
    %32 = arith.index_cast %31 : i32 to index
    %c0_19 = arith.constant 0 : index
    %33 = vector.load %arg8[%32, %c0_19] : memref<64x32xf32, #tpu.memory_space<vmem>>, vector<8x32xf32>
    %cst_20 = arith.constant dense<0.000000e+00> : vector<8x32xf32>
    %34 = tpu.matmul %29, %7, %cst_20 {dimension_numbers = #tpu.dot_dimension_numbers<[1], [0], [0], [1], [0, 0, 1, 1], [], []>} : vector<8x32xf32>, vector<32x32xf32>, vector<8x32xf32> -> vector<8x32xf32>
    %35 = arith.addf %33, %34 : vector<8x32xf32>
    %36 = math.tanh %35 : vector<8x32xf32>
    %c4_i32 = arith.constant 4 : i32
    %c8_i32_21 = arith.constant 8 : i32
    %37 = arith.muli %c4_i32, %c8_i32_21 : i32
    %38 = tpu.assume_multiple %37, 8 : i32
    %39 = arith.index_cast %38 : i32 to index
    %c0_22 = arith.constant 0 : index
    %40 = vector.load %arg8[%39, %c0_22] : memref<64x32xf32, #tpu.memory_space<vmem>>, vector<8x32xf32>
    %cst_23 = arith.constant dense<0.000000e+00> : vector<8x32xf32>
    %41 = tpu.matmul %36, %7, %cst_23 {dimension_numbers = #tpu.dot_dimension_numbers<[1], [0], [0], [1], [0, 0, 1, 1], [], []>} : vector<8x32xf32>, vector<32x32xf32>, vector<8x32xf32> -> vector<8x32xf32>
    %42 = arith.addf %40, %41 : vector<8x32xf32>
    %43 = math.tanh %42 : vector<8x32xf32>
    %c5_i32 = arith.constant 5 : i32
    %c8_i32_24 = arith.constant 8 : i32
    %44 = arith.muli %c5_i32, %c8_i32_24 : i32
    %45 = tpu.assume_multiple %44, 8 : i32
    %46 = arith.index_cast %45 : i32 to index
    %c0_25 = arith.constant 0 : index
    %47 = vector.load %arg8[%46, %c0_25] : memref<64x32xf32, #tpu.memory_space<vmem>>, vector<8x32xf32>
    %cst_26 = arith.constant dense<0.000000e+00> : vector<8x32xf32>
    %48 = tpu.matmul %43, %7, %cst_26 {dimension_numbers = #tpu.dot_dimension_numbers<[1], [0], [0], [1], [0, 0, 1, 1], [], []>} : vector<8x32xf32>, vector<32x32xf32>, vector<8x32xf32> -> vector<8x32xf32>
    %49 = arith.addf %47, %48 : vector<8x32xf32>
    %50 = math.tanh %49 : vector<8x32xf32>
    %c6_i32 = arith.constant 6 : i32
    %c8_i32_27 = arith.constant 8 : i32
    %51 = arith.muli %c6_i32, %c8_i32_27 : i32
    %52 = tpu.assume_multiple %51, 8 : i32
    %53 = arith.index_cast %52 : i32 to index
    %c0_28 = arith.constant 0 : index
    %54 = vector.load %arg8[%53, %c0_28] : memref<64x32xf32, #tpu.memory_space<vmem>>, vector<8x32xf32>
    %cst_29 = arith.constant dense<0.000000e+00> : vector<8x32xf32>
    %55 = tpu.matmul %50, %7, %cst_29 {dimension_numbers = #tpu.dot_dimension_numbers<[1], [0], [0], [1], [0, 0, 1, 1], [], []>} : vector<8x32xf32>, vector<32x32xf32>, vector<8x32xf32> -> vector<8x32xf32>
    %56 = arith.addf %54, %55 : vector<8x32xf32>
    %57 = math.tanh %56 : vector<8x32xf32>
    %c7_i32 = arith.constant 7 : i32
    %c8_i32_30 = arith.constant 8 : i32
    %58 = arith.muli %c7_i32, %c8_i32_30 : i32
    %59 = tpu.assume_multiple %58, 8 : i32
    %60 = arith.index_cast %59 : i32 to index
    %c0_31 = arith.constant 0 : index
    %61 = vector.load %arg8[%60, %c0_31] : memref<64x32xf32, #tpu.memory_space<vmem>>, vector<8x32xf32>
    %cst_32 = arith.constant dense<0.000000e+00> : vector<8x32xf32>
    %62 = tpu.matmul %57, %7, %cst_32 {dimension_numbers = #tpu.dot_dimension_numbers<[1], [0], [0], [1], [0, 0, 1, 1], [], []>} : vector<8x32xf32>, vector<32x32xf32>, vector<8x32xf32> -> vector<8x32xf32>
    %63 = arith.addf %61, %62 : vector<8x32xf32>
    %64 = math.tanh %63 : vector<8x32xf32>
    %c8_i32_33 = arith.constant 8 : i32
    %c0_34 = arith.constant 0 : index
    %c0_35 = arith.constant 0 : index
    %65 = vector.load %arg5[%c0_34, %c0_35] : memref<32x8xf32, #tpu.memory_space<vmem>>, vector<32x8xf32>
    %cst_36 = arith.constant dense<0.000000e+00> : vector<8x8xf32>
    %66 = tpu.matmul %64, %65, %cst_36 {dimension_numbers = #tpu.dot_dimension_numbers<[1], [0], [0], [1], [0, 0, 1, 1], [], []>} : vector<8x32xf32>, vector<32x8xf32>, vector<8x8xf32> -> vector<8x8xf32>
    %c0_37 = arith.constant 0 : index
    %c0_38 = arith.constant 0 : index
    %67 = vector.load %arg6[%c0_37, %c0_38] : memref<1x8xf32, #tpu.memory_space<vmem>>, vector<1x8xf32>
    %68 = vector.broadcast %67 : vector<1x8xf32> to vector<8x8xf32>
    %69 = arith.addf %66, %68 : vector<8x8xf32>
    %c0_39 = arith.constant 0 : index
    %c0_40 = arith.constant 0 : index
    %70 = vector.load %arg7[%c0_39, %c0_40] : memref<8x8xf32, #tpu.memory_space<vmem>>, vector<8x8xf32>
    tpu.vector_store %arg7[%c0_39, %c0_40], %69 {strides = array<i32>} : memref<8x8xf32, #tpu.memory_space<vmem>>, vector<8x8xf32>,
    return
  }
  func.func @transform_0(%arg0: i32) -> (i32, i32) {
    %c0_i32 = arith.constant 0 : i32
    %c0_i32_0 = arith.constant 0 : i32
    %c0_i32_1 = arith.constant 0 : i32
    return %c0_i32, %c0_i32_0 : i32, i32
  }
  func.func @transform_1(%arg0: i32) -> (i32, i32) {
    %c0_i32 = arith.constant 0 : i32
    %c0_i32_0 = arith.constant 0 : i32
    %c0_i32_1 = arith.constant 0 : i32
    return %c0_i32, %c0_i32_0 : i32, i32
  }
  func.func @transform_2(%arg0: i32) -> (i32, i32) {
    %c0_i32 = arith.constant 0 : i32
    %c0_i32_0 = arith.constant 0 : i32
    %c0_i32_1 = arith.constant 0 : i32
    return %c0_i32, %c0_i32_0 : i32, i32
  }
  func.func @transform_3(%arg0: i32) -> (i32, i32) {
    %c0_i32 = arith.constant 0 : i32
    %c0_i32_0 = arith.constant 0 : i32
    %c0_i32_1 = arith.constant 0 : i32
    return %c0_i32, %c0_i32_0 : i32, i32
  }
  func.func @transform_4(%arg0: i32) -> (i32, i32) {
    %c0_i32 = arith.constant 0 : i32
    %c0_i32_0 = arith.constant 0 : i32
    %c0_i32_1 = arith.constant 0 : i32
    return %c0_i32, %c0_i32_0 : i32, i32
  }
  func.func @transform_5(%arg0: i32) -> (i32, i32) {
    %c0_i32 = arith.constant 0 : i32
    %c0_i32_0 = arith.constant 0 : i32
    %c0_i32_1 = arith.constant 0 : i32
    return %c0_i32, %c0_i32_0 : i32, i32
  }
  func.func @transform_6(%arg0: i32) -> (i32, i32) {
    %c0_i32 = arith.constant 0 : i32
    %c0_i32_0 = arith.constant 0 : i32
    %c0_i32_1 = arith.constant 0 : i32
    return %c0_i32, %c0_i32_0 : i32, i32
  }
}

</mosaic_0001>

<bundles_post_ra>
// kernel: tpu_custom_call.1
= control target key start
LH: loop header
LB: loop body
LE: loop exit
PB: predicated region body
PF: predicated region fallthrough
CT: control target
= control target key end

     0   :  { %vm41_vm0 = vcmask 130048   ;;  %v1189_v4 = vmov 0.0|0.0   ;;  %vm1190_vm1 = vmmov 0   ;;  %v1191_v10 = vmov 0.0   ;;  %s1381_s0 = inlined_call_operand.vmem [shape: f32[64,16], index: 0, kind: input, shape index: {}]   ;;  %s1382_s1 = inlined_call_operand.vmem [shape: f32[16,32], index: 1, kind: input, shape index: {}]   ;;  %s1383_s2 = inlined_call_operand.vmem [shape: f32[32,32], index: 2, kind: input, shape index: {}]   ;;  %s1384_s3 = inlined_call_operand.vmem [shape: f32[1,32], index: 3, kind: input, shape index: {}]   ;;  %s1385_s4 = inlined_call_operand.vmem [shape: f32[32,8], index: 4, kind: input, shape index: {}]   ;;  %s1386_s5 = inlined_call_operand.vmem [shape: f32[1,8], index: 5, kind: input, shape index: {}]   ;;  %s1387_s6 = inlined_call_operand.hbm [shape: f32[8,8], index: 6, kind: output, shape index: {}]  }
   0x1   :  { %v32_v0 = vld [vmem:[%s1382_s1] sm:$0xff]  ;;  %v33_v1 = vld [vmem:[%s1382_s1 + $0x8] sm:$0xff]  ;;  %1091 = vmatprep.subr.bf16.mxu1 %v1189_v4  ;;  %v182_v8 = vld [vmem:[%s1383_s2 + $0x10] sm:$0xff]  ;;  %996 = vmatprep.mubr.msk.f32.mxu1 %vm1190_vm1, %v1191_v10 }
   0x2   :  { %v24_v2 = vld [vmem:[%s1381_s0] sm:$0xff]  ;;  %v1087_v3 = vpack.c.bf16 %v33_v1, %v32_v0  ;;  %v181_v6 = vld [vmem:[%s1383_s2 + $0x8] sm:$0xff]  ;;  %v183_v9 = vld [vmem:[%s1383_s2 + $0x18] sm:$0xff] }
   0x3   :  { %976 = vmatprep.mubr.msk.f32.mxu0 %vm41_vm0, %v24_v2  ;;  %v180_v5 = vld [vmem:[%s1383_s2] sm:$0xff] }
   0x4   :  { %v1245_v7 = vpack.c.bf16 %v181_v6, %v180_v5 }
   0x5   :  { %11 = vsyncpa [#allocation4], 0  ;;  %1088 = vmatprep.subr.bf16.mxu0 %v1087_v3  ;;  %v25_v11 = vld [vmem:[%s1381_s0 + $0x8] sm:$0xff]  ;;  %v1259_v12 = vpack.c.bf16 %v183_v9, %v182_v8  ;;  %v26_v13 = vld [vmem:[%s1381_s0 + $0x10] sm:$0xff]  ;;  %vm171_vm2 = vcmask 261120   ;;  %s1192_s8 = smov [#allocation3]  }
   0x6   :  { %1090 = vmatpush3.bf16.msra.mxu0 %v1087_v3  ;;  %1093 = vmatpush3.bf16.msra.mxu1 %v1245_v7  ;;  %v899_v14 = vld [vmem:[%s1384_s3] ss:$0 sm:$0xff]  ;;  %v27_v24 = vld [vmem:[%s1381_s0 + $0x18] sm:$0xff]  ;;  %v29_v26 = vld [vmem:[%s1381_s0 + $0x28] sm:$0xff]  ;;  %s891_s9 = sshll.u32 %s1192_s8, 4  ;;  %vm883_vm3 = vcmask 64512   ;;  %s892_s9 = int_to_ptr.vmem [resolvable:$true] %s891_s9 }
   0x7   :  { %1094 = vmatprep.subr.bf16.mxu1 %v1189_v4  ;;  %1103 = vmatprep.subr.bf16.mxu0 %v1189_v4  ;;  %v28_v25 = vld [vmem:[%s1381_s0 + $0x20] sm:$0xff]  ;;  %v30_v27 = vld [vmem:[%s1381_s0 + $0x30] sm:$0xff]  ;;  %v31_v28 = vld [vmem:[%s1381_s0 + $0x38] sm:$0xff]  ;;  %p1170_p1 = scmp.lt.s32.totalorder %s892_s9, %s892_s9 }
   0x8   :  { %v799_v8 = vld [vmem:[%s1385_s4] sm:$0xff]  ;;  %v800_v9 = vld [vmem:[%s1385_s4 + $0x8] sm:$0xff] }
   0x9   :  { %977 = vmatmul.mubr.msk.f32.vlgmr.msra.gmra.mrb[0].mxu0 %vm41_vm0, %v25_v11  ;;  %v1140_v11 = vpack.c.bf16 %v800_v9, %v799_v8 }
   0xa   :  { %1096 = vmatpush3.bf16.msra.mxu1 %v1259_v12  ;;  %1105 = vmatpush3.bf16.msra.mxu0 %v1245_v7 }
   0xb   :  { %1097 = vmatprep.subr.bf16.mxu1 %v1189_v4  ;;  %1106 = vmatprep.subr.bf16.mxu0 %v1189_v4 }
   0xc   :  { %979 = vmatprep.mubr.msk.f32.mxu0 %vm41_vm0, %v26_v13 }
   0xd   :  { %997 = vmatmul.mubr.f32.vlgmr.msra.gmra.mrb[0].mxu1 %v1191_v10  ;;  %980 = vmatmul.mubr.msk.f32.gmra.mrb[2].mxu0 %vm41_vm0, %v27_v24 }
   0xe   :  { %1099 = vmatpush3.bf16.msra.mxu1 %v1245_v7  ;;  %1007 = vmatprep.mubr.msk.f32.mxu1 %vm1190_vm1, %v1191_v10 }
   0xf   :  { %1100 = vmatprep.subr.bf16.mxu1 %v1189_v4  ;;  %1108 = vmatpush3.bf16.msra.mxu0 %v1259_v12 }
  0x10   :  { %1115 = vmatprep.subr.bf16.mxu0 %v1189_v4  ;;  %982 = vmatprep.mubr.msk.f32.mxu0 %vm41_vm0, %v28_v25 }
  0x11   :  { %983 = vmatmul.mubr.msk.f32.gmra.mrb[4].mxu0 %vm41_vm0, %v29_v26 }
  0x12   :  { %1102 = vmatpush3.bf16.msra.mxu1 %v1259_v12  ;;  %985 = vmatprep.mubr.msk.f32.mxu0 %vm41_vm0, %v30_v27 }
  0x13   :  { %1109 = vmatprep.subr.bf16.mxu1 %v1189_v4 }
  0x15   :  { %986 = vmatmul.mubr.msk.f32.gmra.mrb[6].mxu0 %vm41_vm0, %v31_v28 }
  0x16   :  { %1018 = vmatprep.mubr.msk.f32.mxu0 %vm1190_vm1, %v1191_v10 }
  0xdc   :  { %v978_v15 = vpop.f32.mrb[0].mxu0 }
  0xdd   :  { %v138_v16 = vadd.f32 %v978_v15, %v899_v14  ;;  %v132_v17 = vpop.f32.mrb[1].mxu0 }
  0xde   :  { %v133_v18 = vadd.f32 %v899_v14, %v132_v17 }
  0xdf   :  { %173 = vst.msk [vmem:[#allocation2 + $0x8] sm:$0xff] %vm171_vm2, %v138_v16 }
  0xe0   :  { %172 = vst.msk [vmem:[#allocation2] sm:$0xff] %vm171_vm2, %v133_v18  ;;  %v254_v19 = vpop.f32.mrb[0].mxu1  ;;  %v981_v34 = vpop.f32.mrb[2].mxu0 }
  0xe1   :  { %v998_v20 = vpop.f32.mrb[1].mxu1  ;;  %v148_v35 = vadd.f32 %v981_v34, %v899_v14  ;;  %v142_v36 = vpop.f32.mrb[3].mxu0 }
  0xe2   :  { %v143_v37 = vadd.f32 %v899_v14, %v142_v36 }
  0xe3   :  { %175 = vst.msk [vmem:[#allocation2 + $0x18] sm:$0xff] %vm171_vm2, %v148_v35 }
  0xe4   :  { %174 = vst.msk [vmem:[#allocation2 + $0x10] sm:$0xff] %vm171_vm2, %v143_v37  ;;  %v984_v38 = vpop.f32.mrb[4].mxu0 }
  0xe5   :  { %v158_v39 = vadd.f32 %v984_v38, %v899_v14  ;;  %v152_v40 = vpop.f32.mrb[5].mxu0 }
  0xe6   :  { %v261_v29 = vld [vmem:[#allocation2 + $0x8] sm:$0xff]  ;;  %v153_v41 = vadd.f32 %v899_v14, %v152_v40 }
  0xe7   :  { %v184_v21 = vld [vmem:[#allocation2] sm:$0xff]  ;;  %177 = vst.msk [vmem:[#allocation2 + $0x28] sm:$0xff] %vm171_vm2, %v158_v39 }
  0xe8   :  { %v258_v22 = vadd.f32 %v254_v19, %v184_v21  ;;  %176 = vst.msk [vmem:[#allocation2 + $0x20] sm:$0xff] %vm171_vm2, %v153_v41  ;;  %v987_v42 = vpop.f32.mrb[6].mxu0  ;;  %v915_v19 = vld [vmem:[%s1386_s5] ss:$0 sm:$0xff] }
  0xe9   :  { %v168_v43 = vadd.f32 %v987_v42, %v899_v14  ;;  %v162_v44 = vpop.f32.mrb[7].mxu0 }
  0xea   :  { %1149 = vtanh.f32 %v258_v22  ;;  %v163_v45 = vadd.f32 %v899_v14, %v162_v44  ;;  %v415_v51 = vld [vmem:[#allocation2 + $0x18] sm:$0xff] }
  0xeb   :  { %179 = vst.msk [vmem:[#allocation2 + $0x38] sm:$0xff] %vm171_vm2, %v168_v43  ;;  %v338_v46 = vld [vmem:[#allocation2 + $0x10] sm:$0xff] }
  0xec   :  { %178 = vst.msk [vmem:[#allocation2 + $0x30] sm:$0xff] %vm171_vm2, %v163_v45 }
  0xee   :  { %v569_v61 = vld [vmem:[#allocation2 + $0x28] sm:$0xff] }
  0xef   :  { %v492_v56 = vld [vmem:[#allocation2 + $0x20] sm:$0xff] }
  0xf2   :  { %v723_v14 = vld [vmem:[#allocation2 + $0x38] sm:$0xff] }
  0xf3   :  { %v646_v2 = vld [vmem:[#allocation2 + $0x30] sm:$0xff] }
  0xf4   :  { %v1150_v23 = vpop.eup %1149 }
  0xf5   :  { %1008 = vmatmul.mubr.msk.f32.vlgmr.msra.gmra.mrb[2].mxu1 %vm171_vm2, %v1150_v23 }
  0xf6   :  { %1111 = vmatpush3.bf16.msra.mxu1 %v1245_v7  ;;  %1029 = vmatprep.mubr.msk.f32.mxu1 %vm1190_vm1, %v1191_v10 }
  0xf7   :  { %1112 = vmatprep.subr.bf16.mxu1 %v1189_v4 }
  0xfa   :  { %1114 = vmatpush3.bf16.msra.mxu1 %v1259_v12 }
  0xfb   :  { %1121 = vmatprep.subr.bf16.mxu1 %v1189_v4 }
 0x1c8   :  { %v331_v30 = vpop.f32.mrb[2].mxu1 }
 0x1c9   :  { %v335_v31 = vadd.f32 %v331_v30, %v261_v29  ;;  %v1009_v32 = vpop.f32.mrb[3].mxu1 }
 0x1cb   :  { %1151 = vtanh.f32 %v335_v31 }
 0x1d5   :  { %v1152_v33 = vpop.eup %1151 }
 0x1d6   :  { %1019 = vmatmul.mubr.msk.f32.vlgmr.msra.gmra.mrb[8].mxu0 %vm171_vm2, %v1152_v33 }
 0x1d7   :  { %1117 = vmatpush3.bf16.msra.mxu0 %v1245_v7  ;;  %1040 = vmatprep.mubr.msk.f32.mxu0 %vm1190_vm1, %v1191_v10 }
 0x1d8   :  { %1118 = vmatprep.subr.bf16.mxu0 %v1189_v4 }
 0x1db   :  { %1120 = vmatpush3.bf16.msra.mxu0 %v1259_v12 }
 0x1dc   :  { %1127 = vmatprep.subr.bf16.mxu0 %v1189_v4 }
 0x2a9   :  { %v408_v47 = vpop.f32.mrb[8].mxu0 }
 0x2aa   :  { %v412_v48 = vadd.f32 %v408_v47, %v338_v46  ;;  %v1020_v49 = vpop.f32.mrb[9].mxu0 }
 0x2ac   :  { %1153 = vtanh.f32 %v412_v48 }
 0x2b6   :  { %v1154_v50 = vpop.eup %1153 }
 0x2b7   :  { %1030 = vmatmul.mubr.msk.f32.vlgmr.msra.gmra.mrb[4].mxu1 %vm171_vm2, %v1154_v50 }
 0x2b8   :  { %1123 = vmatpush3.bf16.msra.mxu1 %v1245_v7  ;;  %1051 = vmatprep.mubr.msk.f32.mxu1 %vm1190_vm1, %v1191_v10 }
 0x2b9   :  { %1124 = vmatprep.subr.bf16.mxu1 %v1189_v4 }
 0x2bc   :  { %1126 = vmatpush3.bf16.msra.mxu1 %v1259_v12 }
 0x2bd   :  { %1133 = vmatprep.subr.bf16.mxu1 %v1189_v4 }
 0x38a   :  { %v485_v52 = vpop.f32.mrb[4].mxu1 }
 0x38b   :  { %v489_v53 = vadd.f32 %v485_v52, %v415_v51  ;;  %v1031_v54 = vpop.f32.mrb[5].mxu1 }
 0x38d   :  { %1155 = vtanh.f32 %v489_v53 }
 0x397   :  { %v1156_v55 = vpop.eup %1155 }
 0x398   :  { %1041 = vmatmul.mubr.msk.f32.vlgmr.msra.gmra.mrb[10].mxu0 %vm171_vm2, %v1156_v55 }
 0x399   :  { %1129 = vmatpush3.bf16.msra.mxu0 %v1245_v7  ;;  %1062 = vmatprep.mubr.msk.f32.mxu0 %vm1190_vm1, %v1191_v10 }
 0x39a   :  { %1130 = vmatprep.subr.bf16.mxu0 %v1189_v4 }
 0x39d   :  { %1132 = vmatpush3.bf16.msra.mxu0 %v1259_v12 }
 0x39e   :  { %1139 = vmatprep.subr.bf16.mxu0 %v1189_v4 }
 0x46b   :  { %v562_v57 = vpop.f32.mrb[10].mxu0 }
 0x46c   :  { %v566_v58 = vadd.f32 %v562_v57, %v492_v56  ;;  %v1042_v59 = vpop.f32.mrb[11].mxu0 }
 0x46e   :  { %1157 = vtanh.f32 %v566_v58 }
 0x478   :  { %v1158_v60 = vpop.eup %1157 }
 0x479   :  { %1052 = vmatmul.mubr.msk.f32.vlgmr.msra.gmra.mrb[6].mxu1 %vm171_vm2, %v1158_v60 }
 0x47a   :  { %1135 = vmatpush3.bf16.msra.mxu1 %v1245_v7  ;;  %1073 = vmatprep.mubr.msk.f32.mxu1 %vm1190_vm1, %v1191_v10 }
 0x47b   :  { %1136 = vmatprep.subr.bf16.mxu1 %v1189_v4 }
 0x47e   :  { %1138 = vmatpush3.bf16.msra.mxu1 %v1259_v12  ;;  %v802_v12 = vld [vmem:[%s1385_s4 + $0x18] sm:$0xff] }
 0x54c   :  { %v639_v62 = vpop.f32.mrb[6].mxu1 }
 0x54d   :  { %v643_v63 = vadd.f32 %v639_v62, %v569_v61  ;;  %v1053_v0 = vpop.f32.mrb[7].mxu1 }
 0x54f   :  { %1159 = vtanh.f32 %v643_v63 }
 0x559   :  { %v1160_v1 = vpop.eup %1159 }
 0x55a   :  { %1063 = vmatmul.mubr.msk.f32.vlgmr.msra.gmra.mrb[12].mxu0 %vm171_vm2, %v1160_v1 }
 0x55b   :  { %1084 = vmatprep.mubr.msk.f32.mxu0 %vm1190_vm1, %v1191_v10  ;;  %v801_v10 = vld [vmem:[%s1385_s4 + $0x10] sm:$0xff]  ;;  %1141 = vmatpush3.bf16.msra.mxu0 %v1140_v11  ;;  %s1165_s4 = scalar_lea.vmem %s892_s9, 128 }
 0x55c   :  { %v1143_v13 = vpack.c.bf16 %v802_v12, %v801_v10  ;;  %1142 = vmatprep.subr.bf16.mxu0 %v1189_v4  ;;  %p1166_p0 = scmp.ne.s32.totalorder %s892_s9, %s1165_s4  ;;  %p1171_p2 = scmp.lt.s32.totalorder %s1165_s4, %s1165_s4 }
 0x55e   :  { %p1172_p3 = por %p1171_p2, %p1170_p1 }
 0x55f   :  { %1144 = vmatpush3.bf16.msra.mxu0 %v1143_v13 }
 0x560   :  { %p1173_p4 = pnand %p1172_p3, %p1166_p0 }
 0x62d   :  { %v716_v3 = vpop.f32.mrb[12].mxu0 }
 0x62e   :  { %v720_v5 = vadd.f32 %v716_v3, %v646_v2  ;;  %v1064_v6 = vpop.f32.mrb[13].mxu0 }
 0x630   :  { %1161 = vtanh.f32 %v720_v5 }
 0x63a   :  { %v1162_v7 = vpop.eup %1161 }
 0x63b   :  { %1074 = vmatmul.mubr.msk.f32.vlgmr.msra.gmra.mrb[8].mxu1 %vm171_vm2, %v1162_v7 }
 0x70e   :  { %v793_v15 = vpop.f32.mrb[8].mxu1 }
 0x70f   :  { %v797_v16 = vadd.f32 %v793_v15, %v723_v14  ;;  %v1075_v17 = vpop.f32.mrb[9].mxu1 }
 0x711   :  { %1163 = vtanh.f32 %v797_v16 }
 0x71b   :  { %v1164_v18 = vpop.eup %1163 }
 0x71c   :  { %1085 = vmatmul.mubr.msk.f32.vlgmr.msra.gmra.mrb[14].mxu0 %vm171_vm2, %v1164_v18 }
 0x7ef   :  { %v879_v20 = vpop.f32.mrb[14].mxu0 }
 0x7f0   :  { %v880_v21 = vadd.f32 %v915_v19, %v879_v20  ;;  %v1086_v22 = vpop.f32.mrb[15].mxu0 }
 0x7f2   :  { %884 = vst.msk [vmem:[#allocation3] sm:$0xff] %vm883_vm3, %v880_v21 }
 0x7f3   :  { %1176 = shalt.err (!%p1173_p4)
}
 0x7f4   :  { %s1177_s2 = scalar_lea.hbm %s1387_s6, 128 }
 0x7f5   :  { %p1178_p5 = scmp.ne.s32.totalorder %s1387_s6, %s1177_s2  ;;  %p1181_p6 = scmp.lt.u32.totalorder %s1177_s2, %s1387_s6 }
 0x7f7   :  { %p1183_p7 = pnand %p1181_p6, %p1178_p5 }
 0x7f9   :  { %1186 = shalt.err (!%p1183_p7)
}
 0x7fa   :  { %894 = dma.vmem_to_hbm [thread:$0]  %s892_s9, 128, %s1387_s6, [#allocation4]  }
 0x7fb   :  { %1187 = dma.done.wait [#allocation4], 128  }
 0x7fc   :  { %1188 = vsyncadd [#allocation4], 4294967168 }
 0x7fd   :  { %898 = vsyncpa [#allocation4], 1 }

</bundles_post_ra>
